<compile_context>
chip_gen: v6e
topology: v6e:2x2x1
jax: 0.10.0
libtpu: 0.0.40
codegen_flags: <defaults>
</compile_context>

<pallas_src>
from functools import partial

import jax
import jax.numpy as jnp
from jax.experimental import pallas as pl
from jax.experimental.pallas import tpu as pltpu


# ----------------------------------------------------------------------------
# Config mirroring the PyTorch module's __init__ (only what forward needs).
# ----------------------------------------------------------------------------
CONFIG = {
    "mode": "train",
    "mem_size": 1000,
    "num_epochs": 1,
    "max_moves": 10,
    "batch_size": 8,
    "sync_freq": 10,
    "num_pieces": 4,
    "grid_dimension": 4,           # in_features = 4 * 4**2 = 64
    "layerwisesize": [64, 32, 8],  # hidden, hidden, num_actions
}

LEAKY_SLOPE = 0.01      # torch.nn.LeakyReLU default negative_slope
LANE = 128
BATCH_GRANULE = 16      # bf16 activations: sublane-packed pairs -> 16-row granule
MAX_BATCH_TILE = 256    # training-path batch tile; sweep 128/256/512 if needed


def _round_up(n, m):
    return ((n + m - 1) // m) * m


# ----------------------------------------------------------------------------
# Pallas kernel: fused MLP forward (all matmuls + LeakyReLU in one kernel).
# ----------------------------------------------------------------------------
def _make_mlp_kernel(num_layers, negative_slope):
    def kernel(*refs):
        # refs = (x_ref, w1, b1, w2, b2, ..., wN, bN, out_ref)
        x_ref = refs[0]
        o_ref = refs[-1]
        param_refs = refs[1:-1]

        h = x_ref[...]                                   # bf16 activations in
        for i in range(num_layers):
            w = param_refs[2 * i][...]                   # bf16 weights
            b = param_refs[2 * i + 1][...]               # f32 bias [1, out]
            if i > 0:
                h = h.astype(jnp.bfloat16)               # f32 epilogue -> bf16 MXU in
            # MXU: bf16 x bf16 -> f32 accumulation; epilogue stays f32.
            h = jnp.dot(h, w, preferred_element_type=jnp.float32) + b
            if i != num_layers - 1:                      # no act after last Linear
                h = jnp.maximum(h, negative_slope * h)   # LeakyReLU (mul + max)
        o_ref[...] = h.astype(o_ref.dtype)
        # TODO(synk): for the batch<=granule acting path, fuse the downstream
        # argmax action-selection into this epilogue ([batch,1] int32 output)
        # to remove one launch + HBM round-trip.

    return kernel


# ----------------------------------------------------------------------------
# One-time parameter preparation (call at model init, OUTSIDE the jitted step):
# zero-pad hidden-layer widths to 128 lanes (lane-dense intermediate vregs),
# keep the FINAL layer's real output width, cast weights to bf16. Padded
# rows/cols are zero, so results match the unpadded bf16 network exactly
# (LeakyReLU(0) == 0). Returns (prepared_params, flops_per_row_unpadded).
# ----------------------------------------------------------------------------
def prepare_params(params):
    prepared = []
    prev_out_p = None
    n = len(params)
    flops_per_row = 0
    for idx, (w, b) in enumerate(params):
        fi, fo = w.shape
        flops_per_row += 2 * fi * fo                       # honest (unpadded) flops
        fi_p = fi if idx == 0 else prev_out_p              # x itself is not padded
        fo_p = fo if idx == n - 1 else _round_up(fo, LANE)  # final layer unpadded
        w_p = jnp.zeros((fi_p, fo_p), jnp.float32).at[:fi, :fo].set(w)
        b_p = jnp.zeros((1, fo_p), jnp.float32).at[:, :fo].set(b)
        prepared.append((w_p.astype(jnp.bfloat16), b_p))
        prev_out_p = fo_p
    return prepared, flops_per_row


# ----------------------------------------------------------------------------
# Wrapper: batch-tiled pallas_call. `prepared_params` must come from
# prepare_params(); `flops_per_row` is static (for CostEstimate).
# ----------------------------------------------------------------------------
def rad_dqn_forward(x, prepared_params, *, flops_per_row=None,
                    max_batch_tile=MAX_BATCH_TILE):
    """x: [batch, in_features] f32/bf16. prepared_params: from prepare_params()."""
    batch, in_features = x.shape
    out_dim = prepared_params[-1][0].shape[1]              # real num_actions
    num_layers = len(prepared_params)

    # Stream activations as bf16 (they are cast to bf16 before the MXU anyway).
    x = x.astype(jnp.bfloat16)

    # Pad batch to the bf16 sublane granule; pick the batch tile.
    b_pad = _round_up(batch, BATCH_GRANULE)
    if b_pad >= 2 * BATCH_GRANULE:
        # v7x: keep >=2 grid steps so ("parallel",) can shard the batch grid
        # across both TensorCores; harmless on single-TC v5e/v6e.
        tb = min(max_batch_tile, _round_up((b_pad + 1) // 2, BATCH_GRANULE))
    else:
        tb = b_pad
    b_pad = _round_up(b_pad, tb)
    if b_pad != batch:
        x = jnp.pad(x, ((0, b_pad - batch), (0, 0)))

    grid = (b_pad // tb,)

    flat_args = [x]
    for (w, b) in prepared_params:
        flat_args.extend([w, b])

    # x / out stream over the batch grid; weights & biases stay VMEM-resident
    # (constant index_map -> same block every step, no re-DMA).
    in_specs = [pl.BlockSpec((tb, in_features), lambda i: (i, 0))]
    for (w, b) in prepared_params:
        in_specs.append(pl.BlockSpec(w.shape, lambda i: (0, 0)))
        in_specs.append(pl.BlockSpec(b.shape, lambda i: (0, 0)))
    # Final output keeps the REAL action width (last dim == full extent: legal).
    out_spec = pl.BlockSpec((tb, out_dim), lambda i: (i, 0))

    if flops_per_row is None:   # fallback: padded shapes (over-estimate)
        flops_per_row = 2 * sum(int(w.shape[0]) * int(w.shape[1])
                                for (w, _) in prepared_params)
    flops = flops_per_row * b_pad
    bytes_accessed = (
        int(x.size) * x.dtype.itemsize
        + sum(int(w.size) * w.dtype.itemsize + int(b.size) * b.dtype.itemsize
              for (w, b) in prepared_params)
        + b_pad * out_dim * 4
    )

    out_padded = pl.pallas_call(
        _make_mlp_kernel(num_layers, LEAKY_SLOPE),
        out_shape=jax.ShapeDtypeStruct((b_pad, out_dim), jnp.float32),
        grid=grid,
        in_specs=in_specs,
        out_specs=out_spec,
        compiler_params=pltpu.CompilerParams(
            dimension_semantics=("parallel",)),       # v7x: shard batch over 2 TCs
        cost_estimate=pl.CostEstimate(
            flops=flops, transcendentals=0, bytes_accessed=bytes_accessed),
    )(*flat_args)

    return out_padded[:batch, :]


# ----------------------------------------------------------------------------
# Deterministic parameter init (xavier normal weights, zero bias), matching
# RadDqn.weights_initialization semantics.
# ----------------------------------------------------------------------------
def init_params(key, in_features, layerwisesize):
    params = []
    fan_in = in_features
    for out_size in layerwisesize:
        key, wk = jax.random.split(key)
        std = (2.0 / (fan_in + out_size)) ** 0.5  # xavier normal
        w = std * jax.random.normal(wk, (fan_in, out_size), dtype=jnp.float32)
        b = jnp.zeros((1, out_size), dtype=jnp.float32)
        params.append((w, b))
        fan_in = out_size
    return params


# Pure-JAX references.
def ref_forward_f32(x, params):
    """PyTorch-equivalent f32 forward."""
    h = x
    for i, (w, b) in enumerate(params):
        h = h @ w + b
        if i != len(params) - 1:
            h = jnp.maximum(h, LEAKY_SLOPE * h)
    return h


def ref_forward_bf16(x, params):
    """Matches the kernel's numerics: bf16 operands, f32 accumulation."""
    h = x
    for i, (w, b) in enumerate(params):
        h = jax.lax.dot_general(
            h.astype(jnp.bfloat16), w.astype(jnp.bfloat16),
            dimension_numbers=(((1,), (0,)), ((), ())),
            preferred_element_type=jnp.float32) + b
        if i != len(params) - 1:
            h = jnp.maximum(h, LEAKY_SLOPE * h)
    return h


if __name__ == "__main__":
    key = jax.random.PRNGKey(0)
    in_features = CONFIG["num_pieces"] * CONFIG["grid_dimension"] ** 2  # 64
    num_actions = CONFIG["layerwisesize"][-1]                           # 8

    key, xk, pk, xk2, xk3 = jax.random.split(key, 5)
    params = init_params(pk, in_features, CONFIG["layerwisesize"])

    # One-time prep (outside the jitted step): pad hidden widths + bf16 cast.
    prepared, flops_per_row = prepare_params(params)

    fwd = jax.jit(rad_dqn_forward,
                  static_argnames=("flops_per_row", "max_batch_tile"))

    # Small per-step batch (module's batch_size=8): single 16-row tile.
    x_small = jax.random.normal(xk, (CONFIG["batch_size"], in_features),
                                dtype=jnp.float32)
    out_small = jax.block_until_ready(
        fwd(x_small, prepared, flops_per_row=flops_per_row))
    assert out_small.shape == (CONFIG["batch_size"], num_actions)
    assert jnp.allclose(out_small, ref_forward_bf16(x_small, params),
                        atol=1e-3, rtol=1e-3)
    assert jnp.allclose(out_small, ref_forward_f32(x_small, params),
                        atol=1e-1, rtol=1e-1)  # loose: bf16 MXU operands

    # Mid batch exercising batch padding + a 2-step grid (v7x dual-TC path).
    x_big = jax.random.normal(xk2, (200, in_features), dtype=jnp.float32)
    out_big = jax.block_until_ready(
        fwd(x_big, prepared, flops_per_row=flops_per_row))
    assert out_big.shape == (200, num_actions)
    assert jnp.allclose(out_big, ref_forward_bf16(x_big, params),
                        atol=1e-3, rtol=1e-3)

    # Training-path batch exercising MAX_BATCH_TILE=256 tiles (grid of 2).
    x_train = jax.random.normal(xk3, (512, in_features), dtype=jnp.float32)
    out_train = jax.block_until_ready(
        fwd(x_train, prepared, flops_per_row=flops_per_row))
    assert out_train.shape == (512, num_actions)
    assert jnp.allclose(out_train, ref_forward_bf16(x_train, params),
                        atol=1e-3, rtol=1e-3)

    print("KERNEL_OK")
</pallas_src>

<mosaic_0001>
module attributes {stable_mosaic.version = 11 : i64} {
  func.func @kernel(%arg0: i32, %arg1: memref<16x64xbf16, #tpu.memory_space<vmem>>, %arg2: memref<64x128xbf16, #tpu.memory_space<vmem>>, %arg3: memref<1x128xf32, #tpu.memory_space<vmem>>, %arg4: memref<128x128xbf16, #tpu.memory_space<vmem>>, %arg5: memref<1x128xf32, #tpu.memory_space<vmem>>, %arg6: memref<128x8xbf16, #tpu.memory_space<vmem>>, %arg7: memref<1x8xf32, #tpu.memory_space<vmem>>, %arg8: memref<16x8xf32, #tpu.memory_space<vmem>>) attributes {dimension_semantics = [#tpu.dimension_semantics<parallel>], iteration_bounds = array<i64: 1>, scalar_prefetch = 0 : i64, scratch_operands = 0 : i64, tpu.core_type = #tpu.core_type<tc>, window_params = [{transform_indices = @transform_0, window_bounds = array<i64: 16, 64>}, {pipeline_mode = #tpu.pipeline_mode<synchronous>, transform_indices = @transform_1, window_bounds = array<i64: 64, 128>}, {pipeline_mode = #tpu.pipeline_mode<synchronous>, transform_indices = @transform_2, window_bounds = array<i64: 1, 128>}, {pipeline_mode = #tpu.pipeline_mode<synchronous>, transform_indices = @transform_3, window_bounds = array<i64: 128, 128>}, {pipeline_mode = #tpu.pipeline_mode<synchronous>, transform_indices = @transform_4, window_bounds = array<i64: 1, 128>}, {pipeline_mode = #tpu.pipeline_mode<synchronous>, transform_indices = @transform_5, window_bounds = array<i64: 128, 8>}, {pipeline_mode = #tpu.pipeline_mode<synchronous>, transform_indices = @transform_6, window_bounds = array<i64: 1, 8>}, {transform_indices = @transform_7, window_bounds = array<i64: 16, 8>}]} {
    %c0 = arith.constant 0 : index
    %c0_0 = arith.constant 0 : index
    %0 = vector.load %arg1[%c0, %c0_0] : memref<16x64xbf16, #tpu.memory_space<vmem>>, vector<16x64xbf16>
    %c0_1 = arith.constant 0 : index
    %c0_2 = arith.constant 0 : index
    %1 = vector.load %arg2[%c0_1, %c0_2] : memref<64x128xbf16, #tpu.memory_space<vmem>>, vector<64x128xbf16>
    %c0_3 = arith.constant 0 : index
    %c0_4 = arith.constant 0 : index
    %2 = vector.load %arg3[%c0_3, %c0_4] : memref<1x128xf32, #tpu.memory_space<vmem>>, vector<1x128xf32>
    %cst = arith.constant dense<0.000000e+00> : vector<16x128xf32>
    %3 = tpu.matmul %0, %1, %cst {dimension_numbers = #tpu.dot_dimension_numbers<[1], [0], [0], [1], [0, 0, 1, 1], [], []>} : vector<16x64xbf16>, vector<64x128xbf16>, vector<16x128xf32> -> vector<16x128xf32>
    %4 = vector.broadcast %2 : vector<1x128xf32> to vector<16x128xf32>
    %5 = arith.addf %3, %4 : vector<16x128xf32>
    %cst_5 = arith.constant 0.00999999977 : f32
    %6 = vector.broadcast %cst_5 : f32 to vector<16x128xf32>
    %7 = arith.mulf %6, %5 : vector<16x128xf32>
    %8 = arith.maximumf %5, %7 : vector<16x128xf32>
    %c0_6 = arith.constant 0 : index
    %c0_7 = arith.constant 0 : index
    %9 = vector.load %arg4[%c0_6, %c0_7] : memref<128x128xbf16, #tpu.memory_space<vmem>>, vector<128x128xbf16>
    %c0_8 = arith.constant 0 : index
    %c0_9 = arith.constant 0 : index
    %10 = vector.load %arg5[%c0_8, %c0_9] : memref<1x128xf32, #tpu.memory_space<vmem>>, vector<1x128xf32>
    %11 = arith.truncf %8 : vector<16x128xf32> to vector<16x128xbf16>
    %cst_10 = arith.constant dense<0.000000e+00> : vector<16x128xf32>
    %12 = tpu.matmul %11, %9, %cst_10 {dimension_numbers = #tpu.dot_dimension_numbers<[1], [0], [0], [1], [0, 0, 1, 1], [], []>} : vector<16x128xbf16>, vector<128x128xbf16>, vector<16x128xf32> -> vector<16x128xf32>
    %13 = vector.broadcast %10 : vector<1x128xf32> to vector<16x128xf32>
    %14 = arith.addf %12, %13 : vector<16x128xf32>
    %cst_11 = arith.constant 0.00999999977 : f32
    %15 = vector.broadcast %cst_11 : f32 to vector<16x128xf32>
    %16 = arith.mulf %15, %14 : vector<16x128xf32>
    %17 = arith.maximumf %14, %16 : vector<16x128xf32>
    %c0_12 = arith.constant 0 : index
    %c0_13 = arith.constant 0 : index
    %18 = vector.load %arg6[%c0_12, %c0_13] : memref<128x8xbf16, #tpu.memory_space<vmem>>, vector<128x8xbf16>
    %c0_14 = arith.constant 0 : index
    %c0_15 = arith.constant 0 : index
    %19 = vector.load %arg7[%c0_14, %c0_15] : memref<1x8xf32, #tpu.memory_space<vmem>>, vector<1x8xf32>
    %20 = arith.truncf %17 : vector<16x128xf32> to vector<16x128xbf16>
    %cst_16 = arith.constant dense<0.000000e+00> : vector<16x8xf32>
    %21 = tpu.matmul %20, %18, %cst_16 {dimension_numbers = #tpu.dot_dimension_numbers<[1], [0], [0], [1], [0, 0, 1, 1], [], []>} : vector<16x128xbf16>, vector<128x8xbf16>, vector<16x8xf32> -> vector<16x8xf32>
    %22 = vector.broadcast %19 : vector<1x8xf32> to vector<16x8xf32>
    %23 = arith.addf %21, %22 : vector<16x8xf32>
    %c0_17 = arith.constant 0 : index
    %c0_18 = arith.constant 0 : index
    %24 = vector.load %arg8[%c0_17, %c0_18] : memref<16x8xf32, #tpu.memory_space<vmem>>, vector<16x8xf32>
    tpu.vector_store %arg8[%c0_17, %c0_18], %23 {strides = array<i32>} : memref<16x8xf32, #tpu.memory_space<vmem>>, vector<16x8xf32>,
    return
  }
  func.func @transform_0(%arg0: i32) -> (i32, i32) {
    %c0_i32 = arith.constant 0 : i32
    %c0_i32_0 = arith.constant 0 : i32
    return %arg0, %c0_i32 : i32, i32
  }
  func.func @transform_1(%arg0: i32) -> (i32, i32) {
    %c0_i32 = arith.constant 0 : i32
    %c0_i32_0 = arith.constant 0 : i32
    %c0_i32_1 = arith.constant 0 : i32
    return %c0_i32, %c0_i32_0 : i32, i32
  }
  func.func @transform_2(%arg0: i32) -> (i32, i32) {
    %c0_i32 = arith.constant 0 : i32
    %c0_i32_0 = arith.constant 0 : i32
    %c0_i32_1 = arith.constant 0 : i32
    return %c0_i32, %c0_i32_0 : i32, i32
  }
  func.func @transform_3(%arg0: i32) -> (i32, i32) {
    %c0_i32 = arith.constant 0 : i32
    %c0_i32_0 = arith.constant 0 : i32
    %c0_i32_1 = arith.constant 0 : i32
    return %c0_i32, %c0_i32_0 : i32, i32
  }
  func.func @transform_4(%arg0: i32) -> (i32, i32) {
    %c0_i32 = arith.constant 0 : i32
    %c0_i32_0 = arith.constant 0 : i32
    %c0_i32_1 = arith.constant 0 : i32
    return %c0_i32, %c0_i32_0 : i32, i32
  }
  func.func @transform_5(%arg0: i32) -> (i32, i32) {
    %c0_i32 = arith.constant 0 : i32
    %c0_i32_0 = arith.constant 0 : i32
    %c0_i32_1 = arith.constant 0 : i32
    return %c0_i32, %c0_i32_0 : i32, i32
  }
  func.func @transform_6(%arg0: i32) -> (i32, i32) {
    %c0_i32 = arith.constant 0 : i32
    %c0_i32_0 = arith.constant 0 : i32
    %c0_i32_1 = arith.constant 0 : i32
    return %c0_i32, %c0_i32_0 : i32, i32
  }
  func.func @transform_7(%arg0: i32) -> (i32, i32) {
    %c0_i32 = arith.constant 0 : i32
    %c0_i32_0 = arith.constant 0 : i32
    return %arg0, %c0_i32 : i32, i32
  }
}

</mosaic_0001>

<bundles_post_ra>
// kernel: rad_dqn_forward.1
= control target key start
LH: loop header
LB: loop body
LE: loop exit
PB: predicated region body
PF: predicated region fallthrough
CT: control target
= control target key end

     0   :  { %12 = vsyncpa [#allocation3], 0  ;;  %s702_s0 = inlined_call_operand.vmem [shape: bf16[16,64], index: 0, kind: input, shape index: {}]   ;;  %s703_s1 = inlined_call_operand.vmem [shape: bf16[64,128], index: 1, kind: input, shape index: {}]   ;;  %s704_s2 = inlined_call_operand.hbm [shape: f32[1,128], index: 2, kind: input, shape index: {}]   ;;  %s705_s3 = inlined_call_operand.vmem [shape: bf16[128,128], index: 3, kind: input, shape index: {}]   ;;  %s706_s4 = inlined_call_operand.hbm [shape: f32[1,128], index: 4, kind: input, shape index: {}]   ;;  %s707_s5 = inlined_call_operand.vmem [shape: bf16[128,8], index: 5, kind: input, shape index: {}]   ;;  %s708_s6 = inlined_call_operand.vmem [shape: f32[1,8], index: 6, kind: input, shape index: {}]   ;;  %s709_s7 = inlined_call_operand.vmem [shape: f32[16,8], index: 7, kind: output, shape index: {}]  }
   0x1   :  { %13 = vsyncpa [#allocation5], 0  ;;  %s554_s24 = smov [#allocation2]   ;;  %s555_s26 = smov [#allocation4]  }
   0x2   :  { %s24_s25 = sshll.u32 %s554_s24, 4  ;;  %s36_s27 = sshll.u32 %s555_s26, 4  ;;  %s25_s25 = int_to_ptr.vmem [resolvable:$true] %s24_s25  ;;  %s37_s27 = int_to_ptr.vmem [resolvable:$true] %s36_s27 }
   0x3   :  { %s518_s28 = scalar_lea.vmem %s25_s25, 16  ;;  %s522_s29 = scalar_lea.vmem %s25_s25, 32 }
   0x4   :  { %p519_p0 = scmp.ne.s32.totalorder %s25_s25, %s518_s28  ;;  %p523_p1 = scmp.lt.s32.totalorder %s25_s25, %s25_s25 }
   0x5   :  { %p524_p2 = scmp.lt.s32.totalorder %s522_s29, %s518_s28 }
   0x7   :  { %p525_p3 = por %p524_p2, %p523_p1 }
   0x9   :  { %p526_p4 = pnand %p525_p3, %p519_p0 }
   0xb   :  { %529 = shalt.err (!%p526_p4)
}
   0xc   :  { %27 = dma.hbm_to_vmem [thread:$0]  %s704_s2, 16, %s25_s25, [#allocation3]  }
   0xd   :  { %s538_s9 = scalar_lea.vmem %s37_s27, 16  ;;  %s542_s10 = scalar_lea.vmem %s37_s27, 32 }
   0xe   :  { %p539_p5 = scmp.ne.s32.totalorder %s37_s27, %s538_s9  ;;  %p543_p6 = scmp.lt.s32.totalorder %s37_s27, %s37_s27 }
   0xf   :  { %p544_p7 = scmp.lt.s32.totalorder %s542_s10, %s538_s9 }
  0x11   :  { %p545_p8 = por %p544_p7, %p543_p6 }
  0x13   :  { %p546_p9 = pnand %p545_p8, %p539_p5 }
  0x15   :  { %549 = shalt.err (!%p546_p9)
}
  0x16   :  { %39 = dma.hbm_to_vmem [thread:$0]  %s706_s4, 16, %s37_s27, [#allocation5]  }
  0x17   :  { %550 = dma.done.wait [#allocation3], 16  }
  0x18   :  { %551 = vsyncadd [#allocation3], 4294967280 }
  0x19   :  { %552 = dma.done.wait [#allocation5], 16  }
  0x1a   :  { %553 = vsyncadd [#allocation5], 4294967280  ;;  %v556_v0 = vmov 0.0   ;;  %vm557_vm0 = vmmov 0   ;;  %v489_v1 = vld [vmem:[%s703_s1 + $0x18] sm:$0xff]   ;;  %v490_v2 = vld [vmem:[%s703_s1 + $0x10] sm:$0xff]  }
  0x1b   :  { %433 = vmatprep.subr.bf16.mxu0 %v556_v0  ;;  %441 = vmatprep.mubr.msk.bf16.mxu0 %vm557_vm0, %v556_v0  ;;  %v494_v3 = vld [vmem:[%s705_s3 + $0x38] sm:$0xff]   ;;  %v491_v4 = vld [vmem:[%s703_s1 + $0x8] sm:$0xff]   ;;  %v495_v5 = vld [vmem:[%s705_s3 + $0x30] sm:$0xff]   ;;  %vm97_vm1 = vcmask 523264   ;;  %vm376_vm2 = vcmask 64512  }
  0x1c   :  { %445 = vmatprep.subr.bf16.mxu1 %v556_v0  ;;  %461 = vmatprep.mubr.msk.bf16.mxu1 %vm557_vm0, %v556_v0  ;;  %v492_v6 = vld [vmem:[%s703_s1] sm:$0xff]   ;;  %v496_v7 = vld [vmem:[%s705_s3 + $0x28] sm:$0xff]   ;;  %v498_v10 = vld [vmem:[%s705_s3 + $0x18] sm:$0xff]  }
  0x1d   :  { %434 = vmatpush3.bf16.msra.mxu0 %v489_v1  ;;  %446 = vmatpush3.bf16.msra.mxu1 %v494_v3  ;;  %v493_v8 = vld [vmem:[%s702_s0] sm:$0xff]   ;;  %v499_v11 = vld [vmem:[%s705_s3 + $0x10] sm:$0xff]   ;;  %v500_v12 = vld [vmem:[%s705_s3 + $0x8] sm:$0xff]  }
  0x1e   :  { %435 = vmatprep.subr.bf16.mxu0 %v556_v0  ;;  %447 = vmatprep.subr.bf16.mxu1 %v556_v0  ;;  %v497_v9 = vld [vmem:[%s705_s3 + $0x20] sm:$0xff]   ;;  %v502_v14 = vld [vmem:[%s707_s5 + $0x38] sm:$0xff]   ;;  %v503_v15 = vld [vmem:[%s707_s5 + $0x30] sm:$0xff]  }
  0x1f   :  { %v501_v13 = vld [vmem:[%s705_s3] sm:$0xff]   ;;  %v504_v16 = vld [vmem:[%s707_s5 + $0x28] sm:$0xff]   ;;  %v506_v18 = vld [vmem:[%s707_s5 + $0x18] sm:$0xff]  }
  0x20   :  { %v505_v17 = vld [vmem:[%s707_s5 + $0x20] sm:$0xff]   ;;  %v507_v31 = vld [vmem:[%s707_s5 + $0x10] sm:$0xff]   ;;  %v508_v32 = vld [vmem:[%s707_s5 + $0x8] sm:$0xff]  }
  0x21   :  { %436 = vmatpush3.bf16.msra.mxu0 %v490_v2  ;;  %448 = vmatpush3.bf16.msra.mxu1 %v495_v5  ;;  %v385_v19 = vld [vmem:[#allocation2] ss:$0 sm:$0xff]  ;;  %v392_v34 = vld [vmem:[#allocation4] ss:$0 sm:$0xff] }
  0x22   :  { %437 = vmatprep.subr.bf16.mxu0 %v556_v0  ;;  %449 = vmatprep.subr.bf16.mxu1 %v556_v0  ;;  %v509_v33 = vld [vmem:[%s707_s5] sm:$0xff]  }
  0x23   :  { %v401_v46 = vld [vmem:[%s708_s6] ss:$0 sm:$0xff] }
  0x25   :  { %438 = vmatpush3.bf16.msra.mxu0 %v491_v4  ;;  %450 = vmatpush3.bf16.msra.mxu1 %v496_v7 }
  0x26   :  { %439 = vmatprep.subr.bf16.mxu0 %v556_v0  ;;  %451 = vmatprep.subr.bf16.mxu1 %v556_v0 }
  0x29   :  { %440 = vmatpush3.bf16.msra.mxu0 %v492_v6  ;;  %452 = vmatpush3.bf16.msra.mxu1 %v497_v9 }
  0x2a   :  { %465 = vmatprep.subr.bf16.mxu0 %v556_v0  ;;  %453 = vmatprep.subr.bf16.mxu1 %v556_v0 }
  0x2c   :  { %442 = vmatmul.mubr.msk.bf16.vlgmr.msra.gmra.mxu0 %vm97_vm1, %v493_v8 }
  0x2d   :  { %481 = vmatprep.mubr.msk.bf16.mxu0 %vm557_vm0, %v556_v0  ;;  %454 = vmatpush3.bf16.msra.mxu1 %v498_v10 }
  0x2e   :  { %455 = vmatprep.subr.bf16.mxu1 %v556_v0  ;;  %466 = vmatpush3.bf16.msra.mxu0 %v502_v14 }
  0x2f   :  { %467 = vmatprep.subr.bf16.mxu0 %v556_v0 }
  0x31   :  { %456 = vmatpush3.bf16.msra.mxu1 %v499_v11 }
  0x32   :  { %457 = vmatprep.subr.bf16.mxu1 %v556_v0  ;;  %468 = vmatpush3.bf16.msra.mxu0 %v503_v15 }
  0x33   :  { %469 = vmatprep.subr.bf16.mxu0 %v556_v0 }
  0x35   :  { %458 = vmatpush3.bf16.msra.mxu1 %v500_v12 }
  0x36   :  { %459 = vmatprep.subr.bf16.mxu1 %v556_v0  ;;  %470 = vmatpush3.bf16.msra.mxu0 %v504_v16 }
  0x37   :  { %471 = vmatprep.subr.bf16.mxu0 %v556_v0 }
  0x39   :  { %460 = vmatpush3.bf16.msra.mxu1 %v501_v13 }
  0x3a   :  { %472 = vmatpush3.bf16.msra.mxu0 %v505_v17 }
  0x3b   :  { %473 = vmatprep.subr.bf16.mxu0 %v556_v0 }
  0x3e   :  { %474 = vmatpush3.bf16.msra.mxu0 %v506_v18 }
  0x3f   :  { %475 = vmatprep.subr.bf16.mxu0 %v556_v0 }
  0x42   :  { %476 = vmatpush3.bf16.msra.mxu0 %v507_v31 }
  0x43   :  { %477 = vmatprep.subr.bf16.mxu0 %v556_v0 }
  0x46   :  { %478 = vmatpush3.bf16.msra.mxu0 %v508_v32 }
  0x47   :  { %479 = vmatprep.subr.bf16.mxu0 %v556_v0 }
  0x4a   :  { %480 = vmatpush3.bf16.msra.mxu0 %v509_v33 }
  0xec   :  { %v135_v20 = vpop.f32.mrf.mxu0 }
  0xed   :  { %v136_v21 = vadd.f32 %v385_v19, %v135_v20 }
  0xee   :  { %v443_v22 = vpop.f32.mrf.mxu0 }
  0xef   :  { %v142_v24 = vmul.f32 0.01, %v136_v21 }
  0xf0   :  { %v138_v23 = vpop.f32.mrf.mxu0 }
  0xf1   :  { %v139_v25 = vadd.f32 %v385_v19, %v138_v23  ;;  %v144_v28 = vmax.f32 %v136_v21, %v142_v24 }
  0xf2   :  { %v444_v26 = vpop.f32.mrf.mxu0 }
  0xf3   :  { %v143_v27 = vmul.f32 0.01, %v139_v25 }
  0xf5   :  { %v145_v29 = vmax.f32 %v139_v25, %v143_v27 }
  0xf7   :  { %v163_v30 = vpack.c.bf16 %v145_v29, %v144_v28 }
  0xf9   :  { %462 = vmatmul.mubr.bf16.vlgmr.msra.gmra.mxu1 %v163_v30 }
 0x1b9   :  { %v252_v35 = vpop.f32.mrf.mxu1 }
 0x1ba   :  { %v253_v36 = vadd.f32 %v392_v34, %v252_v35 }
 0x1bb   :  { %v463_v37 = vpop.f32.mrf.mxu1 }
 0x1bc   :  { %v259_v39 = vmul.f32 0.01, %v253_v36 }
 0x1bd   :  { %v255_v38 = vpop.f32.mrf.mxu1 }
 0x1be   :  { %v256_v40 = vadd.f32 %v392_v34, %v255_v38  ;;  %v261_v43 = vmax.f32 %v253_v36, %v259_v39 }
 0x1bf   :  { %v464_v41 = vpop.f32.mrf.mxu1 }
 0x1c0   :  { %v260_v42 = vmul.f32 0.01, %v256_v40 }
 0x1c2   :  { %v262_v44 = vmax.f32 %v256_v40, %v260_v42 }
 0x1c4   :  { %v280_v45 = vpack.c.bf16 %v262_v44, %v261_v43 }
 0x1c6   :  { %482 = vmatmul.mubr.bf16.vlgmr.msra.gmra.mxu0 %v280_v45 }
 0x286   :  { %v369_v47 = vpop.f32.mrf.mxu0 }
 0x287   :  { %v370_v48 = vadd.f32 %v401_v46, %v369_v47 }
 0x288   :  { %v483_v49 = vpop.f32.mrf.mxu0 }
 0x289   :  { %377 = vst.msk [vmem:[%s709_s7] sm:$0xff] %vm376_vm2, %v370_v48 }
 0x28a   :  { %v372_v50 = vpop.f32.mrf.mxu0 }
 0x28b   :  { %v373_v51 = vadd.f32 %v401_v46, %v372_v50 }
 0x28c   :  { %v484_v52 = vpop.f32.mrf.mxu0 }
 0x28d   :  { %378 = vst.msk [vmem:[%s709_s7 + $0x8] sm:$0xff] %vm376_vm2, %v373_v51 }
 0x28e   :  { %383 = vsyncpa [#allocation3], 1 }
 0x28f   :  { %384 = vsyncpa [#allocation5], 1 }

</bundles_post_ra>
